<compile_context>
chip_gen: v7x
topology: tpu7x:2x2x1
jax: 0.10.0
libtpu: 0.0.40
codegen_flags: <defaults>
</compile_context>

<pallas_src>
import math
from functools import partial

import jax
import jax.numpy as jnp
from jax.experimental import pallas as pl
from jax.experimental.pallas import tpu as pltpu


def _round_up(x, m):
    return ((x + m - 1) // m) * m


def _fused_rnn_kernel(x_ref, w_ref, s0_ref, o_ref, cat_ref, *, ipad):
    """One grid step = one timestep (inner axis) of one batch tile (outer axis).

    cat_ref is a persistent VMEM scratch laid out as [ x_t | h_{t-1} ] of shape
    (TB, ipad + HPAD), so the recurrence is a single MXU contraction:
        h_t = relu([x_t | h_{t-1}] @ [W_in^T ; W_h^T])
    """
    t = pl.program_id(1)

    # First timestep of each batch tile: load the initial hidden state
    # (zeros when the PyTorch module is called with state=None).
    @pl.when(t == 0)
    def _():
        cat_ref[:, ipad:] = s0_ref[...]

    # Place this step's input slab next to the carried hidden state.
    cat_ref[:, :ipad] = x_ref[0]

    h = jnp.dot(cat_ref[...], w_ref[...], preferred_element_type=jnp.float32)
    h = jnp.maximum(h, 0.0)

    # Carry state for the next timestep and emit this step's (lane-dense) output.
    cat_ref[:, ipad:] = h
    o_ref[0] = h.astype(o_ref.dtype)


def rnn_hard_cell_sequence(xs, w_in, w_h, state=None):
    """Run RNNHardCell over a full sequence in ONE pallas_call.

    xs:    (seq, B, n_input) float32
    w_in:  (n_hidden, n_input)  -- PyTorch nn.Linear weight layout
    w_h:   (n_hidden, n_hidden)
    state: optional (B, n_hidden) initial hidden state (None -> zeros, which
           exactly reproduces the `state is None` branch of the module).
    Returns (seq, B, n_hidden) float32: the hidden state after every step.
    """
    seq, B, n_input = xs.shape
    n_hidden = w_in.shape[0]

    # Lane-dense padding: last dims -> multiples of 128 (unmasked vst, full MXU
    # tiles); batch -> multiple of 8 (sublane).
    IPAD = _round_up(max(n_input, 1), 128)
    HPAD = _round_up(max(n_hidden, 1), 128)
    BPAD = _round_up(max(B, 1), 8)
    KPAD = IPAD + HPAD

    # Batch tile: largest tile from this list that divides BPAD. Multiple batch
    # tiles map to the "parallel" grid axis (megacore shardable on v7x).
    TB = BPAD
    for cand in (512, 256, 128, 64, 32, 16, 8):
        if BPAD % cand == 0:
            TB = cand
            break
    nb = BPAD // TB

    # One-time host-side layout prep (outside any time loop): transpose the
    # nn.Linear weights once and stack them into a single resident operand.
    w_top = jnp.zeros((IPAD, HPAD), jnp.float32).at[:n_input, :n_hidden].set(w_in.T)
    w_bot = jnp.zeros((HPAD, HPAD), jnp.float32).at[:n_hidden, :n_hidden].set(w_h.T)
    w_stacked = jnp.concatenate([w_top, w_bot], axis=0)  # (KPAD, HPAD)

    xs_p = jnp.zeros((seq, BPAD, IPAD), jnp.float32).at[:, :B, :n_input].set(xs)
    if state is None:
        s0 = jnp.zeros((BPAD, HPAD), jnp.float32)
    else:
        s0 = jnp.zeros((BPAD, HPAD), jnp.float32).at[:B, :n_hidden].set(state)

    kernel = partial(_fused_rnn_kernel, ipad=IPAD)

    out = pl.pallas_call(
        kernel,
        out_shape=jax.ShapeDtypeStruct((seq, BPAD, HPAD), jnp.float32),
        grid_spec=pltpu.PrefetchScalarGridSpec(
            num_scalar_prefetch=0,
            grid=(nb, seq),  # (batch tiles, timesteps)
            in_specs=[
                # x_t tile: a new block each timestep.
                pl.BlockSpec((1, TB, IPAD), lambda b, t: (t, b, 0)),
                # Stacked [W_in^T ; W_h^T]: constant index -> resident in VMEM,
                # loaded from HBM exactly once per batch tile.
                pl.BlockSpec((KPAD, HPAD), lambda b, t: (0, 0)),
                # Initial state tile (read only at t == 0).
                pl.BlockSpec((TB, HPAD), lambda b, t: (b, 0)),
            ],
            out_specs=pl.BlockSpec((1, TB, HPAD), lambda b, t: (t, b, 0)),
            # Persistent [x | h] concatenation / state-carry buffer.
            scratch_shapes=[pltpu.VMEM((TB, KPAD), jnp.float32)],
        ),
        compiler_params=pltpu.CompilerParams(
            # Batch tiles are independent (parallel, v7x megacore); the time
            # axis is a true recurrence and must stay sequential.
            dimension_semantics=("parallel", "arbitrary"),
        ),
    )(xs_p, w_stacked, s0)

    return out[:, :B, :n_hidden]


def rnn_hard_cell(x, w_in, w_h, state=None):
    """Single-step RNNHardCell.forward: relu(x @ W_in^T [+ state @ W_h^T])."""
    return rnn_hard_cell_sequence(x[None], w_in, w_h, state=state)[0]


if __name__ == "__main__":
    B, n_input, n_hidden, seq = 8, 16, 32, 8

    key = jax.random.PRNGKey(0)
    k_wi, k_wh, k_x = jax.random.split(key, 3)

    # Deterministic init matching nn.init.uniform_(-stdv, stdv), stdv = 1/sqrt(n_hidden)
    stdv = 1.0 / math.sqrt(n_hidden)
    w_in = jax.random.uniform(k_wi, (n_hidden, n_input), jnp.float32, -stdv, stdv)
    w_h = jax.random.uniform(k_wh, (n_hidden, n_hidden), jnp.float32, -stdv, stdv)
    xs = jax.random.uniform(k_x, (seq, B, n_input), jnp.float32, -1.0, 1.0)

    # Whole sequence in one fused pallas_call (first step behaves as state=None).
    outs = jax.block_until_ready(rnn_hard_cell_sequence(xs, w_in, w_h, state=None))

    # Single-step path (exact PyTorch forward semantics), both branches.
    h1 = rnn_hard_cell(xs[0], w_in, w_h, state=None)
    h2 = jax.block_until_ready(rnn_hard_cell(xs[1], w_in, w_h, state=h1))

    # Plain-JAX high-precision reference.
    hp = jax.lax.Precision.HIGHEST
    ref = jnp.maximum(jnp.dot(xs[0], w_in.T, precision=hp), 0.0)
    refs = [ref]
    for t in range(1, seq):
        ref = jnp.maximum(
            jnp.dot(xs[t], w_in.T, precision=hp)
            + jnp.dot(ref, w_h.T, precision=hp),
            0.0,
        )
        refs.append(ref)
    ref_seq = jnp.stack(refs)

    assert outs.shape == (seq, B, n_hidden)
    assert jnp.allclose(outs, ref_seq, atol=1e-4, rtol=1e-4), "sequence mismatch"
    assert jnp.allclose(h1, ref_seq[0], atol=1e-4, rtol=1e-4), "step-0 mismatch"
    assert jnp.allclose(h2, ref_seq[1], atol=1e-4, rtol=1e-4), "step-1 mismatch"

    print("KERNEL_OK")
</pallas_src>

<mosaic_0001>
module attributes {stable_mosaic.version = 11 : i64} {
  func.func @_fused_rnn_kernel(%arg0: i32, %arg1: i32, %arg2: memref<1x8x128xf32, #tpu.memory_space<vmem>>, %arg3: memref<256x128xf32, #tpu.memory_space<vmem>>, %arg4: memref<8x128xf32, #tpu.memory_space<vmem>>, %arg5: memref<1x8x128xf32, #tpu.memory_space<vmem>>, %arg6: memref<8x256xf32, #tpu.memory_space<vmem>>) attributes {dimension_semantics = [#tpu.dimension_semantics<parallel>, #tpu.dimension_semantics<arbitrary>], iteration_bounds = array<i64: 1, 8>, scalar_prefetch = 0 : i64, scratch_operands = 1 : i64, tpu.core_type = #tpu.core_type<tc>, window_params = [{transform_indices = @transform_0, window_bounds = array<i64: 1, 8, 128>}, {pipeline_mode = #tpu.pipeline_mode<synchronous>, transform_indices = @transform_1, window_bounds = array<i64: 256, 128>}, {transform_indices = @transform_2, window_bounds = array<i64: 8, 128>}, {transform_indices = @transform_3, window_bounds = array<i64: 1, 8, 128>}]} {
    %c0_i32 = arith.constant 0 : i32
    %0 = arith.cmpi eq, %arg1, %c0_i32 : i32
    %1 = arith.extui %0 : i1 to i32
    %c0_i32_0 = arith.constant 0 : i32
    %2 = arith.cmpi ne, %1, %c0_i32_0 : i32
    scf.if %2 {
      %c0_14 = arith.constant 0 : index
      %c0_15 = arith.constant 0 : index
      %15 = vector.load %arg4[%c0_14, %c0_15] : memref<8x128xf32, #tpu.memory_space<vmem>>, vector<8x128xf32>
      %c0_16 = arith.constant 0 : index
      %c128_17 = arith.constant 128 : index
      %16 = vector.load %arg6[%c0_16, %c128_17] : memref<8x256xf32, #tpu.memory_space<vmem>>, vector<8x128xf32>
      tpu.vector_store %arg6[%c0_16, %c128_17], %15 {strides = array<i32>} : memref<8x256xf32, #tpu.memory_space<vmem>>, vector<8x128xf32>,
    } else {
    }
    %c0 = arith.constant 0 : index
    %c0_1 = arith.constant 0 : index
    %c0_2 = arith.constant 0 : index
    %3 = vector.load %arg2[%c0, %c0_1, %c0_2] : memref<1x8x128xf32, #tpu.memory_space<vmem>>, vector<1x8x128xf32>
    %4 = vector.shape_cast %3 : vector<1x8x128xf32> to vector<8x128xf32>
    %c0_3 = arith.constant 0 : index
    %c0_4 = arith.constant 0 : index
    %5 = vector.load %arg6[%c0_3, %c0_4] : memref<8x256xf32, #tpu.memory_space<vmem>>, vector<8x128xf32>
    tpu.vector_store %arg6[%c0_3, %c0_4], %4 {strides = array<i32>} : memref<8x256xf32, #tpu.memory_space<vmem>>, vector<8x128xf32>,
    %c0_5 = arith.constant 0 : index
    %c0_6 = arith.constant 0 : index
    %6 = vector.load %arg6[%c0_5, %c0_6] : memref<8x256xf32, #tpu.memory_space<vmem>>, vector<8x256xf32>
    %c0_7 = arith.constant 0 : index
    %c0_8 = arith.constant 0 : index
    %7 = vector.load %arg3[%c0_7, %c0_8] : memref<256x128xf32, #tpu.memory_space<vmem>>, vector<256x128xf32>
    %cst = arith.constant dense<0.000000e+00> : vector<8x128xf32>
    %8 = tpu.matmul %6, %7, %cst {dimension_numbers = #tpu.dot_dimension_numbers<[1], [0], [0], [1], [0, 0, 1, 1], [], []>} : vector<8x256xf32>, vector<256x128xf32>, vector<8x128xf32> -> vector<8x128xf32>
    %cst_9 = arith.constant 0.000000e+00 : f32
    %9 = vector.broadcast %cst_9 : f32 to vector<8x128xf32>
    %10 = arith.maximumf %8, %9 : vector<8x128xf32>
    %c0_10 = arith.constant 0 : index
    %c128 = arith.constant 128 : index
    %11 = vector.load %arg6[%c0_10, %c128] : memref<8x256xf32, #tpu.memory_space<vmem>>, vector<8x128xf32>
    tpu.vector_store %arg6[%c0_10, %c128], %10 {strides = array<i32>} : memref<8x256xf32, #tpu.memory_space<vmem>>, vector<8x128xf32>,
    %c0_11 = arith.constant 0 : index
    %c0_12 = arith.constant 0 : index
    %c0_13 = arith.constant 0 : index
    %12 = vector.load %arg5[%c0_11, %c0_12, %c0_13] : memref<1x8x128xf32, #tpu.memory_space<vmem>>, vector<1x8x128xf32>
    %13 = vector.shape_cast %12 : vector<1x8x128xf32> to vector<8x128xf32>
    %14 = vector.shape_cast %10 : vector<8x128xf32> to vector<1x8x128xf32>
    tpu.vector_store %arg5[%c0_11, %c0_12, %c0_13], %14 {strides = array<i32>} : memref<1x8x128xf32, #tpu.memory_space<vmem>>, vector<1x8x128xf32>,
    return
  }
  func.func @transform_0(%arg0: i32, %arg1: i32) -> (i32, i32, i32) {
    %c0_i32 = arith.constant 0 : i32
    %c0_i32_0 = arith.constant 0 : i32
    return %arg1, %arg0, %c0_i32 : i32, i32, i32
  }
  func.func @transform_1(%arg0: i32, %arg1: i32) -> (i32, i32) {
    %c0_i32 = arith.constant 0 : i32
    %c0_i32_0 = arith.constant 0 : i32
    %c0_i32_1 = arith.constant 0 : i32
    return %c0_i32, %c0_i32_0 : i32, i32
  }
  func.func @transform_2(%arg0: i32, %arg1: i32) -> (i32, i32) {
    %c0_i32 = arith.constant 0 : i32
    %c0_i32_0 = arith.constant 0 : i32
    return %arg0, %c0_i32 : i32, i32
  }
  func.func @transform_3(%arg0: i32, %arg1: i32) -> (i32, i32, i32) {
    %c0_i32 = arith.constant 0 : i32
    %c0_i32_0 = arith.constant 0 : i32
    return %arg1, %arg0, %c0_i32 : i32, i32, i32
  }
}

</mosaic_0001>

<bundles_post_ra>
// kernel: tpu_custom_call.1
= control target key start
LH: loop header
LB: loop body
LE: loop exit
PB: predicated region body
PF: predicated region fallthrough
CT: control target
= control target key end

     0   :  { %8 = vsyncpa [#allocation4], 0  ;;  %s1087_s0 = inlined_call_operand.hbm [shape: f32[8,8,128], index: 0, kind: input, shape index: {}]   ;;  %s1088_s1 = inlined_call_operand.hbm [shape: f32[256,128], index: 1, kind: input, shape index: {}]   ;;  %s1089_s2 = inlined_call_operand.hbm [shape: f32[8,128], index: 2, kind: input, shape index: {}]   ;;  %s1090_s3 = inlined_call_operand.hbm [shape: f32[8,8,128], index: 3, kind: output, shape index: {}]  }
   0x1   :  { %10 = vsyncpa [#allocation4 + $0x1], 0 }
   0x2   :  { %11 = vsyncpa [#allocation7], 0 }
   0x3   :  { %12 = vsyncpa [#allocation5], 0 }
   0x4   :  { %14 = vsyncpa [#allocation5 + $0x1], 0  ;;  %s838_s12 = smov 0   ;;  %s840_s13 = smov 0  }
   0x5   :  { %s842_s14 = smov 0   ;;  %s844_s15 = smov 0  }
   0x6   :  { %s846_s16 = smov 0   ;;  %s848_s17 = smov 0  }
   0x7 LB: > { %s468_s18 = sadd.s32 4294967295, %s810_s17   ;;  %s469_s19 = sadd.s32 4294967294, %s810_s17   ;;  %s810_s17 = sphi %s848_s17, %s20_s17   ;;  %s806_s16 = sphi %s846_s16, %s1112_s16   ;;  %s802_s15 = sphi %s844_s15, %s1111_s15   ;;  %s798_s14 = sphi %s842_s14, %s1110_s14   ;;  %s794_s13 = sphi %s840_s13, %s1109_s13   ;;  %s790_s12 = sphi %s838_s12, %s1108_s12  }
   0x8   : > { %p54_p0 = scmp.ne.s32.totalorder %s794_s13, %s790_s12  ;;  %p872_p1 = scmp.eq.s32.totalorder %s468_s18, 0 }
   0x9   : > { %p876_p2 = scmp.eq.s32.totalorder %s468_s18, 7  ;;  %p133_p3 = scmp.eq.s32.totalorder %s469_s19, 7 }
   0xa   : > { %s1095_s20 = scalar_select %p872_p1, 1, 0 }
   0xb   : > { %s1096_s21 = scalar_select %p876_p2, 1, 0 }
   0xc   : > { %p882_p4 = por %p872_p1, %p54_p0  ;;  %p470_p5 = scmp.ge.s32.totalorder %s810_s17, 1 }
   0xd   : > { %p887_p6 = por %p133_p3, %p54_p0  ;;  %p140_p7 = scmp.lt.s32.totalorder %s810_s17, 9 }
   0xe   : > { %s1097_s22 = scalar_select %p882_p4, 1, 0 }
   0xf   : > { %s1098_s23 = scalar_select %p887_p6, 1, 0 }
  0x10   : > { %p892_p8 = pnand %p470_p5, %p140_p7  ;;  %s812_s25 = smov [#allocation6]  }
  0x11   : > { %s152_s26 = sshll.u32 %s812_s25, 4  ;;  %s813_s28 = smov [#allocation8]   ;;  %s153_s26 = int_to_ptr.vmem [resolvable:$true] %s152_s26 }
  0x12   : > { %s1099_s24 = scalar_select %p892_p8, 1, 0 }
  0x13   : > { %p565_p9 = pneg %p892_p8  ;;  %s168_s29 = sshll.u32 %s813_s28, 4  ;;  %s904_s29 = int_to_ptr.vmem [resolvable:$true] %s168_s29 }
  0x14   : > { %s638_s5 = scalar_lea.hbm %s1088_s1, 4096 }
  0x15   : > { %p900_p10 = pnand %p565_p9, %p872_p1  ;;  %p639_p11 = scmp.ne.s32.totalorder %s1088_s1, %s638_s5 }
  0x16   : > { %p645_p3 = scmp.lt.u32.totalorder %s638_s5, %s1088_s1 }
  0x17   : > { %p640_p12 = pneg %p900_p10 }
  0x19   : > { %p641_p13 = pnand %p640_p12, %p639_p11 }
  0x1b   : > { %p642_p0 = pneg %p641_p13 }
  0x1d   : > { %p647_p5 = pnand %p645_p3, %p642_p0 }
  0x1f   : > { %650 = shalt.err (!%p647_p5)
}
  0x20   : > { %s651_s10 = scalar_lea.vmem %s153_s26, 4096  ;;  %p659_p1 = scmp.lt.s32.totalorder %s153_s26, %s153_s26 }
  0x21   : > { %p652_p7 = scmp.ne.s32.totalorder %s153_s26, %s651_s10  ;;  %p660_p4 = scmp.lt.s32.totalorder %s651_s10, %s651_s10 }
  0x23   : > { %p654_p9 = pnand %p652_p7, %p640_p12  ;;  %p661_p8 = por %p660_p4, %p659_p1 }
  0x25   : > { %p655_p6 = pneg %p654_p9 }
  0x27   : > { %p662_p2 = pnand %p661_p8, %p655_p6 }
  0x29   : > { %665 = shalt.err (!%p662_p2)
}
  0x2a   : > { %s814_s11 = smov 128   ;;  %s815_s18 = smov 8  }
  0x2b   : > { %568 = dma.hbm_to_vmem [thread:$0]  (!%p900_p10), %s1088_s1, 4096, %s153_s26, [#allocation7], %s814_s11, %s814_s11, %s815_s18  }
  0x2c   : > { %s666_s4 = scalar_lea.hbm %s1089_s2, 128 }
  0x2d   : > { %p667_p11 = scmp.ne.s32.totalorder %s1089_s2, %s666_s4  ;;  %p673_p4 = scmp.lt.u32.totalorder %s666_s4, %s1089_s2 }
  0x2f   : > { %p669_p1 = pnand %p667_p11, %p640_p12 }
  0x31   : > { %p670_p2 = pneg %p669_p1 }
  0x33   : > { %p675_p6 = pnand %p673_p4, %p670_p2 }
  0x35   : > { %678 = shalt.err (!%p675_p6)
}
  0x36   : > { %s679_s26 = scalar_lea.vmem %s904_s29, 128  ;;  %p687_p3 = scmp.lt.s32.totalorder %s904_s29, %s904_s29 }
  0x37   : > { %p680_p8 = scmp.ne.s32.totalorder %s904_s29, %s679_s26  ;;  %p688_p5 = scmp.lt.s32.totalorder %s679_s26, %s679_s26 }
  0x39   : > { %p682_p13 = pnand %p680_p8, %p640_p12  ;;  %p689_p7 = por %p688_p5, %p687_p3 }
  0x3b   : > { %p683_p0 = pneg %p682_p13 }
  0x3d   : > { %p690_p9 = pnand %p689_p7, %p683_p0 }
  0x3f   : > { %693 = shalt.err (!%p690_p9)
}
  0x40   : > { %571 = dma.hbm_to_vmem [thread:$0]  (!%p900_p10), %s1089_s2, 128, %s904_s29, [#allocation7]  }
  0x41   : > { %s29_s11 = sadd.s32 1, %s806_s16  ;;  %s41_s18 = sadd.s32 1, %s798_s14 }
  0x42   : > { %p30_p12 = scmp.ge.s32.totalorder %s29_s11, 8  ;;  %p48_p11 = scmp.ne.s32.totalorder %s798_s14, %s794_s13 }
  0x43   : > { %p49_p1 = scmp.eq.s32.totalorder %s810_s17, 0  ;;  %p582_p2 = scmp.lt.s32.totalorder %s810_s17, 8 }
  0x44   : > { %s1114_s11 = smov (%p30_p12, %s29_s11), 0  ;;  %p1101_p6 = scmp.ne.s32.totalorder %s1096_s21, 0 }
  0x45   : > { %p50_p4 = por %p49_p1, %p48_p11  ;;  %s36_s19 = ssub.s32 %s806_s16, %s1114_s11 }
  0x46   : > { %p963_p8 = por %p1101_p6, %p48_p11  ;;  %s179_s25 = sand.u32 1, %s798_s14  }
  0x47   : > { %p39_p13 = scmp.eq.s32.totalorder %s36_s19, 0  ;;  %s474_s29 = sshll.u32 %s179_s25, 3 }
  0x48   : > { %s475_s28 = sshll.u32 %s806_s16, 7  ;;  %s183_s21 = scalar_lea.vmem [#allocation3], %s474_s29 }
  0x49   : > { %s972_s30 = scalar_select %p39_p13, %s798_s14, %s41_s18  }
  0x4a   : > { %s977_s6 = scalar_lea.hbm %s1087_s0, %s475_s28  ;;  %s191_s7 = sshll.u32 %s183_s21, 4  ;;  %s985_s7 = int_to_ptr.vmem [resolvable:$true] %s191_s7 }
  0x4b   : > { %p981_p10 = pnand %p582_p2, %p50_p4  ;;  %s180_s26 = scalar_lea.sflag [#allocation4], %s179_s25 }
  0x4c   : > { %s694_s9 = scalar_lea.hbm %s977_s6, 128  ;;  %s699_s19 = scalar_lea.hbm %s1087_s0, 1024 }
  0x4d   : > { %p695_p0 = scmp.ne.s32.totalorder %s977_s6, %s694_s9  ;;  %p696_p3 = pneg %p981_p10 }
  0x4e   : > { %p700_p9 = scmp.lt.u32.totalorder %s977_s6, %s1087_s0  ;;  %p701_p12 = scmp.lt.u32.totalorder %s699_s19, %s694_s9 }
  0x4f   : > { %p697_p5 = pnand %p696_p3, %p695_p0  ;;  %p703_p1 = scmp.lt.u32.totalorder %s694_s9, %s977_s6 }
  0x50   : > { %p702_p11 = por %p701_p12, %p700_p9 }
  0x51   : > { %p698_p7 = pneg %p697_p5 }
  0x52   : > { %p704_p2 = por %p703_p1, %p702_p11 }
  0x54   : > { %p705_p4 = pnand %p704_p2, %p698_p7 }
  0x56   : > { %708 = shalt.err (!%p705_p4)
}
  0x57   : > { %s709_s25 = scalar_lea.vmem %s985_s7, 128  ;;  %s816_s4 = smov [#allocation3]  }
  0x58   : > { %p710_p6 = scmp.ne.s32.totalorder %s985_s7, %s709_s25  ;;  %s714_s5 = sshll.u32 %s816_s4, 4  ;;  %s715_s5 = int_to_ptr.vmem [resolvable:$false] %s714_s5 }
  0x59   : > { %s716_s21 = scalar_lea.vmem %s715_s5, 256  ;;  %p717_p5 = scmp.lt.s32.totalorder %s985_s7, %s715_s5 }
  0x5a   : > { %p712_p13 = pnand %p710_p6, %p696_p3  ;;  %p718_p9 = scmp.lt.s32.totalorder %s716_s21, %s709_s25 }
  0x5c   : > { %p713_p0 = pneg %p712_p13  ;;  %p719_p12 = por %p718_p9, %p717_p5 }
  0x5e   : > { %p720_p11 = pnand %p719_p12, %p713_p0 }
  0x60   : > { %723 = shalt.err (!%p720_p11)
}
  0x61   : > { %575 = dma.hbm_to_vmem [thread:$0]  (!%p981_p10), %s977_s6, 128, %s985_s7, %s180_s26  }
  0x62   : > { %p1104_p7 = scmp.ne.s32.totalorder %s1099_s24, 0 }
  0x63   : > { %s1015_s9 = sand.u32 (!%p1104_p7), 1, %s794_s13   ;;  %p1105_p3 = scmp.ne.s32.totalorder (!%p1104_p7), %s1097_s22, 0 }
  0x64   : > { %200 = sbr.rel (%p1104_p7) target bundleno = 386 (0x182), region = 32  ;;  %s477_s10 = sshll.u32 (!%p1104_p7), %s1015_s9, 3 }
  0x65   : > { %s203_s18 = scalar_lea.sflag (!%p1104_p7), [#allocation4], %s1015_s9  ;;  %s1019_s19 = scalar_lea.vmem (!%p1104_p7), [#allocation3], %s477_s10 }
  0x6b   : > { %777 = dma.done.wait (%p1105_p3), %s203_s18, 128  }
  0x6c   : > { %779 = vsyncadd (%p1105_p3), %s203_s18, 4294967168  ;;  %p1106_p10 = scmp.ne.s32.totalorder %s1095_s20, 0 }
  0x6e   : > { %781 = dma.done.wait (%p1106_p10), [#allocation7], 4224  }
  0x6f   : > { %783 = vsyncadd (%p1106_p10), [#allocation7], 4294963072  ;;  %s1029_s24 = scalar_lea.vmem [#allocation9], %s477_s10  ;;  %p481_p1 = scmp.ne.s32.totalorder %s802_s15, 0 }
  0x70   : > { %v241_v0 = vld [vmem:[#allocation8] sm:$0xff] (!%p481_p1) }
  0x71   : > { %240 = sbr.rel (%p481_p1) target bundleno = 120 (0x78), region = 48  ;;  %242 = vst [vmem:[#allocation2 + $0x8] sm:$0xff] (!%p481_p1), %v241_v0 }
  0x78 PF: > { %v263_v1 = vld [vmem:[#allocation6 + $0x80] sm:$0xff]  ;;  %v264_v2 = vld [vmem:[#allocation6 + $0x88] sm:$0xff]  ;;  %v265_v6 = vld [vmem:[#allocation6 + $0x90] sm:$0xff]  ;;  %s483_s20 = sshll.u32 %s802_s15, 7  ;;  %s367_s22 = sshll.u32 %s1029_s24, 4  ;;  %s1040_s22 = int_to_ptr.vmem [resolvable:$true] %s367_s22 }
  0x79   : > { %v247_v3 = vld [vmem:[#allocation6] sm:$0xff]  ;;  %v521_v4 = vpack.c.bf16 %v264_v2, %v263_v1  ;;  %v248_v5 = vld [vmem:[#allocation6 + $0x8] sm:$0xff]  ;;  %v266_v7 = vld [vmem:[#allocation6 + $0x98] sm:$0xff]  ;;  %s1038_s8 = scalar_lea.hbm %s1090_s3, %s483_s20  ;;  %s353_s26 = scalar_lea.sflag [#allocation5], %s1015_s9 }
  0x7a   : > { %v523_v8 = vpack.c.bf16 %v248_v5, %v247_v3  ;;  %v525_v9 = vpack.c.bf16 %v266_v7, %v265_v6  ;;  %v249_v10 = vld [vmem:[#allocation6 + $0x10] sm:$0xff]  ;;  %v250_v11 = vld [vmem:[#allocation6 + $0x18] sm:$0xff]  ;;  %v267_v12 = vld [vmem:[#allocation6 + $0xa0] sm:$0xff]  ;;  %s724_s29 = scalar_lea.vmem %s1040_s22, 128  ;;  %s817_s15 = smov [#allocation9]  }
  0x7b   : > { %522 = vmatprep.subr.bf16.mxu0 %v521_v4  ;;  %v268_v13 = vld [vmem:[#allocation6 + $0xa8] sm:$0xff]  ;;  %v527_v14 = vpack.c.bf16 %v250_v11, %v249_v10  ;;  %v251_v16 = vld [vmem:[#allocation6 + $0x20] sm:$0xff]  ;;  %v269_v18 = vld [vmem:[#allocation6 + $0xb0] sm:$0xff]  ;;  %p725_p2 = scmp.ne.s32.totalorder %s1040_s22, %s724_s29  ;;  %s728_s28 = sshll.u32 %s817_s15, 4  ;;  %s729_s28 = int_to_ptr.vmem [resolvable:$false] %s728_s28 }
  0x7c   : > { %524 = vmatpush3.bf16.msra.mxu0 %v523_v8  ;;  %v529_v15 = vpack.c.bf16 %v268_v13, %v267_v12  ;;  %v252_v17 = vld [vmem:[#allocation6 + $0x28] sm:$0xff]  ;;  %v270_v19 = vld [vmem:[#allocation6 + $0xb8] sm:$0xff]  ;;  %v253_v22 = vld [vmem:[#allocation6 + $0x30] sm:$0xff]  ;;  %s730_s25 = scalar_lea.vmem %s729_s28, 256  ;;  %p731_p13 = scmp.lt.s32.totalorder %s1040_s22, %s729_s28 }
  0x7d   : > { %526 = vmatprep.subr.bf16.mxu0 %v525_v9  ;;  %v531_v20 = vpack.c.bf16 %v252_v17, %v251_v16  ;;  %v533_v21 = vpack.c.bf16 %v270_v19, %v269_v18  ;;  %v254_v23 = vld [vmem:[#allocation6 + $0x38] sm:$0xff]  ;;  %v271_v24 = vld [vmem:[#allocation6 + $0xc0] sm:$0xff]  ;;  %v272_v25 = vld [vmem:[#allocation6 + $0xc8] sm:$0xff]  ;;  %p726_p4 = pnand %p725_p2, %p963_p8  ;;  %p732_p0 = scmp.lt.s32.totalorder %s730_s25, %s724_s29 }
  0x7e   : > { %v246_v26 = vld [vmem:[#allocation2 + $0x8] sm:$0xff]  ;;  %v243_v27 = vld [vmem:[%s1019_s19] sm:$0xff]  ;;  %v535_v28 = vpack.c.bf16 %v254_v23, %v253_v22  ;;  %v537_v29 = vpack.c.bf16 %v272_v25, %v271_v24  ;;  %v255_v30 = vld [vmem:[#allocation6 + $0x40] sm:$0xff] }
  0x7f   : > { %343 = vmatprep.mubr.f32.mxu0 %v246_v26  ;;  %v256_v31 = vld [vmem:[#allocation6 + $0x48] sm:$0xff]  ;;  %v273_v32 = vld [vmem:[#allocation6 + $0xd0] sm:$0xff]  ;;  %v274_v33 = vld [vmem:[#allocation6 + $0xd8] sm:$0xff]  ;;  %p727_p6 = pneg %p726_p4  ;;  %p733_p5 = por %p732_p0, %p731_p13 }
  0x80   : > { %528 = vmatpush3.bf16.msra.mxu0 %v527_v14  ;;  %v539_v34 = vpack.c.bf16 %v256_v31, %v255_v30  ;;  %v541_v35 = vpack.c.bf16 %v274_v33, %v273_v32  ;;  %v257_v36 = vld [vmem:[#allocation6 + $0x50] sm:$0xff]  ;;  %v258_v37 = vld [vmem:[#allocation6 + $0x58] sm:$0xff]  ;;  %v275_v38 = vld [vmem:[#allocation6 + $0xe0] sm:$0xff] }
  0x81   : > { %530 = vmatprep.subr.bf16.mxu0 %v529_v15  ;;  %v276_v39 = vld [vmem:[#allocation6 + $0xe8] sm:$0xff]  ;;  %v543_v40 = vpack.c.bf16 %v258_v37, %v257_v36  ;;  %v259_v42 = vld [vmem:[#allocation6 + $0x60] sm:$0xff]  ;;  %v277_v44 = vld [vmem:[#allocation6 + $0xf0] sm:$0xff]  ;;  %p734_p9 = pnand %p733_p5, %p727_p6 }
  0x82   : > { %v545_v41 = vpack.c.bf16 %v276_v39, %v275_v38  ;;  %v260_v43 = vld [vmem:[#allocation6 + $0x68] sm:$0xff]  ;;  %v278_v45 = vld [vmem:[#allocation6 + $0xf8] sm:$0xff]  ;;  %v261_v48 = vld [vmem:[#allocation6 + $0x70] sm:$0xff] }
  0x83   : > { %v547_v46 = vpack.c.bf16 %v260_v43, %v259_v42  ;;  %v549_v47 = vpack.c.bf16 %v278_v45, %v277_v44  ;;  %v262_v49 = vld [vmem:[#allocation6 + $0x78] sm:$0xff] }
  0x84   : > { %532 = vmatpush3.bf16.msra.mxu0 %v531_v20  ;;  %v551_v50 = vpack.c.bf16 %v262_v49, %v261_v48 }
  0x85   : > { %534 = vmatprep.subr.bf16.mxu0 %v533_v21 }
  0x88   : > { %536 = vmatpush3.bf16.msra.mxu0 %v535_v28 }
  0x89   : > { %538 = vmatprep.subr.bf16.mxu0 %v537_v29 }
  0x8c   : > { %540 = vmatpush3.bf16.msra.mxu0 %v539_v34 }
  0x8d   : > { %542 = vmatprep.subr.bf16.mxu0 %v541_v35 }
  0x90   : > { %544 = vmatpush3.bf16.msra.mxu0 %v543_v40 }
  0x91   : > { %546 = vmatprep.subr.bf16.mxu0 %v545_v41 }
  0x94   : > { %548 = vmatpush3.bf16.msra.mxu0 %v547_v46 }
  0x95   : > { %550 = vmatprep.subr.bf16.mxu0 %v549_v47 }
  0x98   : > { %552 = vmatpush3.bf16.msra.mxu0 %v551_v50 }
  0x9b   : > { %344 = vmatmul.mubr.f32.vlgmr.msra.gmra.mrb[0].mxu0 %v243_v27 }
 0x16e   : > { %v518_v51 = vpop.f32.mrb[0].mxu0 }
 0x16f   : > { %v519_v52 = vpop.f32.mrb[1].mxu0 }
 0x170   : > { %v520_v53 = vadd.f32 %v519_v52, %v518_v51 }
 0x172   : > { %v349_v54 = vmax.f32 %v520_v53, 0.0 }
 0x174   : > { %350 = vst [vmem:[#allocation2 + $0x8] sm:$0xff] %v349_v54  ;;  %351 = vst [vmem:[%s1029_s24] sm:$0xff] %v349_v54 }
 0x175   : > { %737 = shalt.err (!%p734_p9)
}
 0x176   : > { %s738_s4 = scalar_lea.hbm %s1038_s8, 128  ;;  %s742_s9 = scalar_lea.hbm %s1090_s3, 1024 }
 0x177   : > { %p739_p12 = scmp.ne.s32.totalorder %s1038_s8, %s738_s4  ;;  %p743_p3 = scmp.lt.u32.totalorder %s1038_s8, %s1090_s3 }
 0x178   : > { %p744_p10 = scmp.lt.u32.totalorder %s742_s9, %s738_s4  ;;  %p746_p2 = scmp.lt.u32.totalorder %s738_s4, %s1038_s8 }
 0x179   : > { %p740_p11 = pnand %p739_p12, %p963_p8 }
 0x17a   : > { %p745_p1 = por %p744_p10, %p743_p3 }
 0x17b   : > { %p741_p7 = pneg %p740_p11 }
 0x17c   : > { %p747_p4 = por %p746_p2, %p745_p1 }
 0x17e   : > { %p748_p6 = pnand %p747_p4, %p741_p7 }
 0x180   : > { %751 = shalt.err (!%p748_p6)
}
 0x181   : > { %563 = dma.vmem_to_hbm [thread:$0]  (%p963_p8), %s1040_s22, 128, %s1038_s8, %s353_s26  }
 0x182 PF: > { %p585_p13 = scmp.ge.s32.totalorder %s810_s17, 2  ;;  %s379_s19 = sand.u32 1, %s790_s12  }
 0x183   : > { %p1107_p0 = scmp.ne.s32.totalorder %s1098_s23, 0  ;;  %s380_s24 = scalar_lea.sflag [#allocation5], %s379_s19 }
 0x185   : > { %p577_p5 = pnand %p585_p13, %p1107_p0 }
 0x187   : > { %785 = dma.done.wait (!%p577_p5), %s380_s24, 128  }
 0x188   : > { %787 = vsyncadd (!%p577_p5), %s380_s24, 4294967168  ;;  %s20_s17 = sadd.s32 1, %s810_s17   ;;  %s1108_s12 = smov %s794_s13 }
 0x189   : > { %p17_p9 = scmp.ge.s32.totalorder %s20_s17, 10   ;;  %s1109_s13 = smov %s798_s14 }
 0x18a   : > { %s1110_s14 = smov %s972_s30  ;;  %s1111_s15 = smov %s806_s16 }
 0x18b   : > { %s1112_s16 = smov %s1114_s11  ;;  %19 = sbr.rel (!%p17_p9) target bundleno = 7 (0x7), region = 90 }
 0x192   :  { %385 = vsyncpa [#allocation4], 1 }
 0x193   :  { %387 = vsyncpa [#allocation4 + $0x1], 1 }
 0x194   :  { %388 = vsyncpa [#allocation7], 1 }
 0x195   :  { %389 = vsyncpa [#allocation5], 1 }
 0x196   :  { %391 = vsyncpa [#allocation5 + $0x1], 1 }

</bundles_post_ra>
